<compile_context>
chip_gen: v6e
topology: v6e:2x2x1
jax: 0.10.0
libtpu: 0.0.40
codegen_flags: <defaults>
</compile_context>

<pallas_src>
import jax
import jax.numpy as jnp
from jax.experimental import pallas as pl
from jax.experimental.pallas import tpu as pltpu


_LANE_CHOICES = (1024, 512, 256, 128)   # lane-dense last-dim candidates (multiples of 128)
_MAX_TILE_ROWS = 1024                    # (1024, 1024) f32 block = 4 MiB per array per buffer
_MIN_GRID_BLOCKS = 4                     # >= 2 blocks per TensorCore on v7x megacore
_PALLAS_MIN_ELEMS = 1 << 22              # ~4M elems: below this the fused XLA path is as fast


def _round_up(x, m):
    return ((x + m - 1) // m) * m


def _pick_lanes(n):
    """Largest lane-dense last dim that divides n exactly (no padding needed)."""
    for lanes in _LANE_CHOICES:
        if n % lanes == 0:
            return lanes
    return None   # ragged size -> caller uses the fused jnp path (avoids pad/slice copies)


def _pick_tile_rows(rows):
    if rows <= 8:
        return rows                       # single full-extent block
    target = pl.cdiv(rows, _MIN_GRID_BLOCKS)        # aim for >= 4 grid blocks
    return min(_MAX_TILE_ROWS, _round_up(target, 8))  # sublane-aligned


def _make_lif_kernel(decay, threshold):
    """Kernel body with decay/threshold baked in as compile-time constants."""

    def _lif_kernel(x_ref, s_ref, spikes_ref, new_s_ref):
        s = s_ref[...] * decay + x_ref[...]
        spk = (s > threshold).astype(s.dtype)
        spikes_ref[...] = spk
        new_s_ref[...] = s - spk * threshold

    return _lif_kernel


def _lif_pallas_impl(input_tensor, state, *, decay, threshold):
    orig_shape = input_tensor.shape
    dtype = state.dtype
    n = input_tensor.size

    lanes = _pick_lanes(n)
    assert lanes is not None, "non lane-divisible sizes are handled by the jnp fallback"
    rows = n // lanes
    tile_rows = _pick_tile_rows(rows)
    grid = (pl.cdiv(rows, tile_rows),)   # partial last block handled by Pallas masking

    # Contiguous reshapes are bitcasts -> no extra HBM traffic (no pad / un-pad).
    x2 = input_tensor.reshape(rows, lanes)
    s2 = state.reshape(rows, lanes)

    block = pl.BlockSpec((tile_rows, lanes), lambda i: (i, 0))

    spikes2, new_s2 = pl.pallas_call(
        _make_lif_kernel(float(decay), float(threshold)),
        grid=grid,
        in_specs=[block, block],
        out_specs=[block, block],
        out_shape=[
            jax.ShapeDtypeStruct((rows, lanes), dtype),
            jax.ShapeDtypeStruct((rows, lanes), dtype),
        ],
        # inputs: (x2, s2); outputs: (spikes, new_state) -> reuse the state buffer.
        input_output_aliases={1: 1},
        compiler_params=pltpu.CompilerParams(
            dimension_semantics=("parallel",),
            vmem_limit_bytes=48 * 1024 * 1024,
        ),
    )(x2, s2)

    return spikes2.reshape(orig_shape), new_s2.reshape(orig_shape)


_lif_pallas = jax.jit(_lif_pallas_impl, static_argnames=("decay", "threshold"))
# Donating the state makes the update genuinely in-place end-to-end (the caller's
# state HBM buffer is reused for new_state; caller must not touch it afterwards).
_lif_pallas_donated = jax.jit(
    _lif_pallas_impl, static_argnames=("decay", "threshold"), donate_argnums=(1,)
)


def _lif_fused_jnp(input_tensor, state, decay_rate, threshold):
    # Single fused XLA elementwise pass (used for tiny or ragged shapes).
    thr = jnp.asarray(threshold, state.dtype)
    s = state * jnp.asarray(decay_rate, state.dtype) + input_tensor
    spk = (s > thr).astype(state.dtype)
    return spk, s - spk * thr


def fast_lif_step(input_tensor, state, decay_rate, threshold, *,
                  use_pallas=None, donate_state=False):
    """Functional equivalent of FastLIFCell.forward -> (spikes, new_state)."""
    assert input_tensor.shape == state.shape
    n = input_tensor.size
    lanes = _pick_lanes(n)
    if use_pallas is None:
        use_pallas = n >= _PALLAS_MIN_ELEMS
    if lanes is None or not use_pallas:
        # Ragged (not a multiple of 128) or small: the fused path avoids the
        # pad -> kernel -> slice HBM round trips a padded Pallas call would need.
        return _lif_fused_jnp(input_tensor, state, decay_rate, threshold)
    fn = _lif_pallas_donated if donate_state else _lif_pallas
    return fn(input_tensor, state, decay=float(decay_rate), threshold=float(threshold))


def _reference(input_tensor, state, decay_rate, threshold):
    s = state * decay_rate + input_tensor
    spk = (s > threshold).astype(s.dtype)
    return spk, s - spk * threshold


def _check(shape, decay_rate, threshold, key, *, force_pallas=False, donate=False):
    k1, k2 = jax.random.split(key)
    x = jax.random.normal(k1, shape, dtype=jnp.float32)
    state = jax.random.normal(k2, shape, dtype=jnp.float32)

    # Reference computed up front (the donated variant invalidates its state arg).
    ref_spikes, ref_state = _reference(x, state, decay_rate, threshold)

    state_arg = jnp.copy(state) if donate else state
    spikes, new_state = fast_lif_step(
        x, state_arg, decay_rate, threshold,
        use_pallas=True if force_pallas else None, donate_state=donate)
    jax.block_until_ready((spikes, new_state))

    assert spikes.shape == shape and new_state.shape == shape
    assert jnp.allclose(spikes, ref_spikes, atol=1e-6)
    assert jnp.allclose(new_state, ref_state, atol=1e-6)


if __name__ == "__main__":
    key = jax.random.PRNGKey(0)
    k1, k2, k3, k4, k5 = jax.random.split(key, 5)

    decay_rate = 0.9
    threshold = 0.5

    # Small NCHW case consistent with the module: 2048 elems -> (2, 1024), grid=(1,).
    _check((2, 4, 16, 16), decay_rate, threshold, k1, force_pallas=True)

    # Same small case with donated state (true in-place update of the caller buffer).
    _check((2, 4, 16, 16), decay_rate, threshold, k2, force_pallas=True, donate=True)

    # Ragged shape (n=1155, not a multiple of 128): dispatches to the fused XLA path.
    _check((3, 5, 7, 11), decay_rate, threshold, k3)

    # Partial-last-block path: n=12288 -> rows=12, tile_rows=8, grid=(2,), masked tail.
    _check((3, 4, 32, 32), decay_rate, threshold, k4, force_pallas=True)

    # Larger case: rows=2048, tile_rows=512, grid=(4,) -> pipelined, megacore-balanced.
    _check((8, 16, 128, 128), decay_rate, threshold, k5, force_pallas=True)

    print("KERNEL_OK")
</pallas_src>

<mosaic_0001>
module attributes {stable_mosaic.version = 11 : i64} {
  func.func @_lif_kernel(%arg0: i32, %arg1: memref<2x1024xf32, #tpu.memory_space<vmem>>, %arg2: memref<2x1024xf32, #tpu.memory_space<vmem>>, %arg3: memref<2x1024xf32, #tpu.memory_space<vmem>>, %arg4: memref<2x1024xf32, #tpu.memory_space<vmem>>) attributes {dimension_semantics = [#tpu.dimension_semantics<parallel>], iteration_bounds = array<i64: 1>, scalar_prefetch = 0 : i64, scratch_operands = 0 : i64, tpu.core_type = #tpu.core_type<tc>, window_params = [{transform_indices = @transform_0, window_bounds = array<i64: 2, 1024>}, {transform_indices = @transform_1, window_bounds = array<i64: 2, 1024>}, {transform_indices = @transform_2, window_bounds = array<i64: 2, 1024>}, {transform_indices = @transform_3, window_bounds = array<i64: 2, 1024>}]} {
    %c0 = arith.constant 0 : index
    %c0_0 = arith.constant 0 : index
    %0 = vector.load %arg2[%c0, %c0_0] : memref<2x1024xf32, #tpu.memory_space<vmem>>, vector<2x1024xf32>
    %cst = arith.constant 0.899999976 : f32
    %1 = vector.broadcast %cst : f32 to vector<2x1024xf32>
    %2 = arith.mulf %0, %1 : vector<2x1024xf32>
    %c0_1 = arith.constant 0 : index
    %c0_2 = arith.constant 0 : index
    %3 = vector.load %arg1[%c0_1, %c0_2] : memref<2x1024xf32, #tpu.memory_space<vmem>>, vector<2x1024xf32>
    %4 = arith.addf %2, %3 : vector<2x1024xf32>
    %cst_3 = arith.constant 5.000000e-01 : f32
    %5 = vector.broadcast %cst_3 : f32 to vector<2x1024xf32>
    %6 = arith.cmpf ogt, %4, %5 : vector<2x1024xf32>
    %7 = arith.extui %6 : vector<2x1024xi1> to vector<2x1024xi32>
    %8 = arith.sitofp %7 : vector<2x1024xi32> to vector<2x1024xf32>
    %c0_4 = arith.constant 0 : index
    %c0_5 = arith.constant 0 : index
    %9 = vector.load %arg3[%c0_4, %c0_5] : memref<2x1024xf32, #tpu.memory_space<vmem>>, vector<2x1024xf32>
    tpu.vector_store %arg3[%c0_4, %c0_5], %8 {strides = array<i32>} : memref<2x1024xf32, #tpu.memory_space<vmem>>, vector<2x1024xf32>,
    %cst_6 = arith.constant 5.000000e-01 : f32
    %10 = vector.broadcast %cst_6 : f32 to vector<2x1024xf32>
    %11 = arith.mulf %8, %10 : vector<2x1024xf32>
    %12 = arith.subf %4, %11 : vector<2x1024xf32>
    %c0_7 = arith.constant 0 : index
    %c0_8 = arith.constant 0 : index
    %13 = vector.load %arg4[%c0_7, %c0_8] : memref<2x1024xf32, #tpu.memory_space<vmem>>, vector<2x1024xf32>
    tpu.vector_store %arg4[%c0_7, %c0_8], %12 {strides = array<i32>} : memref<2x1024xf32, #tpu.memory_space<vmem>>, vector<2x1024xf32>,
    return
  }
  func.func @transform_0(%arg0: i32) -> (i32, i32) {
    %c0_i32 = arith.constant 0 : i32
    %c0_i32_0 = arith.constant 0 : i32
    return %arg0, %c0_i32 : i32, i32
  }
  func.func @transform_1(%arg0: i32) -> (i32, i32) {
    %c0_i32 = arith.constant 0 : i32
    %c0_i32_0 = arith.constant 0 : i32
    return %arg0, %c0_i32 : i32, i32
  }
  func.func @transform_2(%arg0: i32) -> (i32, i32) {
    %c0_i32 = arith.constant 0 : i32
    %c0_i32_0 = arith.constant 0 : i32
    return %arg0, %c0_i32 : i32, i32
  }
  func.func @transform_3(%arg0: i32) -> (i32, i32) {
    %c0_i32 = arith.constant 0 : i32
    %c0_i32_0 = arith.constant 0 : i32
    return %arg0, %c0_i32 : i32, i32
  }
}

</mosaic_0001>

<bundles_post_ra>
// kernel: _lif_pallas_impl.1
= control target key start
LH: loop header
LB: loop body
LE: loop exit
PB: predicated region body
PF: predicated region fallthrough
CT: control target
= control target key end

     0   :  { %v46_v8 = vmov 0.0   ;;  %s91_s0 = inlined_call_operand.vmem [shape: f32[2,1024], index: 0, kind: input, shape index: {}]   ;;  %s92_s1 = inlined_call_operand.vmem [shape: f32[2,1024], index: 1, kind: input, shape index: {}, may-alias: {1,3}]   ;;  %s93_s2 = inlined_call_operand.vmem [shape: f32[2,1024], index: 2, kind: output, shape index: {0}]   ;;  %s94_s3 = inlined_call_operand.vmem [shape: f32[2,1024], index: 3, kind: output, shape index: {1}, may-alias: {1,3}]  }
   0x1   :  { %v13_v0 = vld [vmem:[%s92_s1] sm:$0xff]  ;;  %v14_v2 = vld [vmem:[%s92_s1 + $0x8] sm:$0xff] }
   0x2   :  { %v17_v1 = vld [vmem:[%s91_s0] sm:$0xff]  ;;  %v15_v3 = vmul.f32 0.9, %v13_v0  ;;  %v16_v4 = vmul.f32 0.9, %v14_v2  ;;  %v18_v5 = vld [vmem:[%s91_s0 + $0x8] sm:$0xff] }
   0x4   :  { %v19_v6 = vadd.f32 %v17_v1, %v15_v3  ;;  %v20_v7 = vadd.f32 %v18_v5, %v16_v4 }
   0x6   :  { %vm21_vm0 = vcmp.gt.f32.partialorder %v19_v6, 0.5  ;;  %vm22_vm1 = vcmp.gt.f32.partialorder %v20_v7, 0.5 }
   0x7   :  { %v43_v9 = vsel %vm21_vm0, 1.0, %v46_v8  ;;  %v44_v10 = vsel %vm22_vm1, 1.0, %v46_v8 }
   0x8   :  { %27 = vst [vmem:[%s93_s2] sm:$0xff] %v43_v9  ;;  %v29_v11 = vmul.f32 0.5, %v43_v9  ;;  %28 = vst [vmem:[%s93_s2 + $0x8] sm:$0xff] %v44_v10  ;;  %v30_v12 = vmul.f32 0.5, %v44_v10 }
   0xa   :  { %v31_v13 = vsub.f32 %v19_v6, %v29_v11  ;;  %v32_v14 = vsub.f32 %v20_v7, %v30_v12 }
   0xc   :  { %33 = vst [vmem:[%s94_s3] sm:$0xff] %v31_v13  ;;  %34 = vst [vmem:[%s94_s3 + $0x8] sm:$0xff] %v32_v14 }

</bundles_post_ra>
